<compile_context>
chip_gen: v7x
topology: tpu7x:2x2x1
jax: 0.10.0
libtpu: 0.0.40
codegen_flags: <defaults>
</compile_context>

<pallas_src>
from functools import partial

import jax
import jax.numpy as jnp
from jax.experimental import pallas as pl
from jax.experimental.pallas import tpu as pltpu


def _attn_span_kernel(start_ref, end_ref, enc_ref, *refs,
                      use_proj, use_endpoints):
    # Unpack the variable ref list (depends on static config flags).
    idx = 0
    if use_proj:
        wpT_ref, bp_ref = refs[0], refs[1]
        idx = 2
    wa_ref, ba_ref = refs[idx], refs[idx + 1]
    o_ref = refs[idx + 2]

    b = pl.program_id(0)
    start = start_ref[b]          # scalar int32 from SMEM (scalar prefetch)
    end = end_ref[b]

    x = enc_ref[0]                # [T, D]
    if use_proj:
        # Projection: [T, D] @ [D, P] on the MXU, f32 accumulate.
        x = jnp.dot(x, wpT_ref[...],
                    preferred_element_type=jnp.float32) + bp_ref[...]

    T = x.shape[0]
    pos = jax.lax.broadcasted_iota(jnp.int32, (T, 1), 0)          # [T, 1]
    in_span = jnp.logical_and(pos >= start, pos <= end)
    mask_add = jnp.where(in_span, 0.0, -1e10)                     # [T, 1] f32

    # attention_params(x): Linear(P, 1) done as an elementwise mul + lane
    # reduce (avoids a degenerate 1-lane MXU matmul).
    logits = jnp.sum(x * wa_ref[...], axis=-1, keepdims=True)     # [T, 1]
    logits = logits + ba_ref[...] + mask_add

    # Masked softmax over the sequence axis (matches torch semantics: the
    # -1e10 additive mask then softmax over dim=1).
    m = jnp.max(logits, axis=0, keepdims=True)
    e = jnp.exp(logits - m)
    wts = e / jnp.sum(e, axis=0, keepdims=True)                   # [T, 1]

    attn_term = jnp.sum(wts * x, axis=0, keepdims=True)           # [1, P]

    if use_endpoints:
        sel_s = (pos == start).astype(x.dtype)                    # one-hot [T,1]
        sel_e = (pos == end).astype(x.dtype)
        h_s = jnp.sum(sel_s * x, axis=0, keepdims=True)           # [1, P]
        h_e = jnp.sum(sel_e * x, axis=0, keepdims=True)           # [1, P]
        out = jnp.concatenate([h_s, h_e, attn_term], axis=-1)     # [1, 3P]
    else:
        out = attn_term

    # Single lane-dense store of the whole span representation.
    o_ref[0] = out.astype(o_ref.dtype)


def attn_span_repr(encoded_input, start_ids, end_ids, params, *,
                   use_proj=True, use_endpoints=True,
                   compute_dtype=jnp.float32,
                   vmem_limit_bytes=32 * 1024 * 1024):
    """encoded_input: [B, T, D]; start_ids/end_ids: [B] -> [B, out_dim]."""
    B, T, D = encoded_input.shape
    P = params["w_proj"].shape[0] if use_proj else D
    out_dim = 3 * P if use_endpoints else P

    enc = encoded_input.astype(compute_dtype)
    start_ids = start_ids.astype(jnp.int32)
    end_ids = end_ids.astype(jnp.int32)

    # Parameter glue in the wrapper: pre-transpose so the kernel does x @ W.
    inputs = [enc]
    in_specs = [pl.BlockSpec((1, T, D), lambda b, s, e: (b, 0, 0))]
    if use_proj:
        wpT = params["w_proj"].T.astype(compute_dtype)            # [D, P]
        bp = params["b_proj"].reshape(1, P).astype(jnp.float32)
        inputs += [wpT, bp]
        in_specs += [pl.BlockSpec((D, P), lambda b, s, e: (0, 0)),
                     pl.BlockSpec((1, P), lambda b, s, e: (0, 0))]
    wa = params["w_attn"].reshape(1, P).astype(jnp.float32)        # Linear(P,1) weight
    ba = params["b_attn"].reshape(1, 1).astype(jnp.float32)
    inputs += [wa, ba]
    in_specs += [pl.BlockSpec((1, P), lambda b, s, e: (0, 0)),
                 pl.BlockSpec((1, 1), lambda b, s, e: (0, 0))]

    kernel = partial(_attn_span_kernel,
                     use_proj=use_proj, use_endpoints=use_endpoints)

    out = pl.pallas_call(
        kernel,
        out_shape=jax.ShapeDtypeStruct((B, 1, out_dim), jnp.float32),
        grid_spec=pltpu.PrefetchScalarGridSpec(
            num_scalar_prefetch=2,
            grid=(B,),
            in_specs=in_specs,
            out_specs=pl.BlockSpec((1, 1, out_dim), lambda b, s, e: (b, 0, 0)),
        ),
        compiler_params=pltpu.CompilerParams(
            dimension_semantics=("parallel",),
            vmem_limit_bytes=vmem_limit_bytes,
        ),
    )(start_ids, end_ids, *inputs)

    return out.reshape(B, out_dim)


def reference(encoded_input, start_ids, end_ids, params, *,
              use_proj=True, use_endpoints=True):
    x = encoded_input
    if use_proj:
        x = x @ params["w_proj"].T + params["b_proj"]
    T = x.shape[1]
    pos = jnp.arange(T)[None, :]
    mask = ((pos >= start_ids[:, None]) &
            (pos <= end_ids[:, None])).astype(jnp.float32)[..., None]
    attn_mask = (1.0 - mask) * -1e10
    logits = x @ params["w_attn"].T + params["b_attn"] + attn_mask
    wts = jax.nn.softmax(logits, axis=1)
    attn_term = jnp.sum(wts * x, axis=1)
    if use_endpoints:
        bidx = jnp.arange(x.shape[0])
        h_s = x[bidx, start_ids]
        h_e = x[bidx, end_ids]
        return jnp.concatenate([h_s, h_e, attn_term], axis=1)
    return attn_term


if __name__ == "__main__":
    batch, seq, in_dim, proj_dim = 4, 16, 32, 64
    key = jax.random.PRNGKey(0)
    ks = jax.random.split(key, 10)
    sp = 1.0 / float(in_dim) ** 0.5     # mimic PyTorch default uniform init
    sa = 1.0 / float(proj_dim) ** 0.5

    params = {
        "w_proj": jax.random.uniform(ks[0], (proj_dim, in_dim), jnp.float32, -sp, sp),
        "b_proj": jax.random.uniform(ks[1], (proj_dim,), jnp.float32, -sp, sp),
        "w_attn": jax.random.uniform(ks[2], (1, proj_dim), jnp.float32, -sa, sa),
        "b_attn": jax.random.uniform(ks[3], (1,), jnp.float32, -sa, sa),
    }
    enc = jax.random.normal(ks[4], (batch, seq, in_dim), jnp.float32)
    start_ids = jax.random.randint(ks[5], (batch,), 0, seq // 2)
    lengths = jax.random.randint(ks[6], (batch,), 0, seq // 2)
    end_ids = jnp.minimum(start_ids + lengths, seq - 1)

    # Config 1: use_proj=True, use_endpoints=True (full module path).
    out = attn_span_repr(enc, start_ids, end_ids, params,
                         use_proj=True, use_endpoints=True)
    out = jax.block_until_ready(out)
    ref = reference(enc, start_ids, end_ids, params,
                    use_proj=True, use_endpoints=True)
    assert out.shape == (batch, 3 * proj_dim), out.shape
    assert jnp.allclose(out, ref, atol=1e-4, rtol=1e-4), \
        float(jnp.max(jnp.abs(out - ref)))

    # Config 2: use_proj=False, use_endpoints=False (attention pooling only).
    sd = 1.0 / float(in_dim) ** 0.5
    params2 = {
        "w_attn": jax.random.uniform(ks[7], (1, in_dim), jnp.float32, -sd, sd),
        "b_attn": jax.random.uniform(ks[8], (1,), jnp.float32, -sd, sd),
    }
    out2 = attn_span_repr(enc, start_ids, end_ids, params2,
                          use_proj=False, use_endpoints=False)
    out2 = jax.block_until_ready(out2)
    ref2 = reference(enc, start_ids, end_ids, params2,
                     use_proj=False, use_endpoints=False)
    assert out2.shape == (batch, in_dim), out2.shape
    assert jnp.allclose(out2, ref2, atol=1e-4, rtol=1e-4), \
        float(jnp.max(jnp.abs(out2 - ref2)))

    print("KERNEL_OK")
</pallas_src>

<mosaic_0001>
module attributes {stable_mosaic.version = 11 : i64} {
  func.func @_attn_span_kernel(%arg0: i32, %arg1: memref<4xi32, #tpu.memory_space<smem>>, %arg2: memref<4xi32, #tpu.memory_space<smem>>, %arg3: memref<1x16x32xf32, #tpu.memory_space<vmem>>, %arg4: memref<32x64xf32, #tpu.memory_space<vmem>>, %arg5: memref<1x64xf32, #tpu.memory_space<vmem>>, %arg6: memref<1x64xf32, #tpu.memory_space<vmem>>, %arg7: memref<1x1xf32, #tpu.memory_space<vmem>>, %arg8: memref<1x1x192xf32, #tpu.memory_space<vmem>>) attributes {dimension_semantics = [#tpu.dimension_semantics<parallel>], iteration_bounds = array<i64: 4>, scalar_prefetch = 2 : i64, scratch_operands = 0 : i64, tpu.core_type = #tpu.core_type<tc>, window_params = [{transform_indices = @transform_0, window_bounds = array<i64: 1, 16, 32>}, {pipeline_mode = #tpu.pipeline_mode<synchronous>, transform_indices = @transform_1, window_bounds = array<i64: 32, 64>}, {pipeline_mode = #tpu.pipeline_mode<synchronous>, transform_indices = @transform_2, window_bounds = array<i64: 1, 64>}, {pipeline_mode = #tpu.pipeline_mode<synchronous>, transform_indices = @transform_3, window_bounds = array<i64: 1, 64>}, {pipeline_mode = #tpu.pipeline_mode<synchronous>, transform_indices = @transform_4, window_bounds = array<i64: 1, 1>}, {transform_indices = @transform_5, window_bounds = array<i64: 1, 1, 192>}]} {
    %0 = arith.index_cast %arg0 : i32 to index
    %1 = memref.load %arg1[%0] : memref<4xi32, #tpu.memory_space<smem>>
    %2 = arith.index_cast %arg0 : i32 to index
    %3 = memref.load %arg2[%2] : memref<4xi32, #tpu.memory_space<smem>>
    %c0 = arith.constant 0 : index
    %c0_0 = arith.constant 0 : index
    %c0_1 = arith.constant 0 : index
    %4 = vector.load %arg3[%c0, %c0_0, %c0_1] : memref<1x16x32xf32, #tpu.memory_space<vmem>>, vector<1x16x32xf32>
    %5 = vector.shape_cast %4 : vector<1x16x32xf32> to vector<16x32xf32>
    %c0_2 = arith.constant 0 : index
    %c0_3 = arith.constant 0 : index
    %6 = vector.load %arg4[%c0_2, %c0_3] : memref<32x64xf32, #tpu.memory_space<vmem>>, vector<32x64xf32>
    %cst = arith.constant dense<0.000000e+00> : vector<16x64xf32>
    %7 = tpu.matmul %5, %6, %cst {dimension_numbers = #tpu.dot_dimension_numbers<[1], [0], [0], [1], [0, 0, 1, 1], [], []>} : vector<16x32xf32>, vector<32x64xf32>, vector<16x64xf32> -> vector<16x64xf32>
    %c0_4 = arith.constant 0 : index
    %c0_5 = arith.constant 0 : index
    %8 = vector.load %arg5[%c0_4, %c0_5] : memref<1x64xf32, #tpu.memory_space<vmem>>, vector<1x64xf32>
    %9 = vector.broadcast %8 : vector<1x64xf32> to vector<16x64xf32>
    %10 = arith.addf %7, %9 : vector<16x64xf32>
    %11 = tpu.iota {dimensions = array<i32: 0>} : vector<16x1xi32>
    %12 = vector.broadcast %1 : i32 to vector<16x1xi32>
    %13 = arith.cmpi sge, %11, %12 : vector<16x1xi32>
    %14 = vector.broadcast %3 : i32 to vector<16x1xi32>
    %15 = arith.cmpi sle, %11, %14 : vector<16x1xi32>
    %16 = arith.andi %13, %15 : vector<16x1xi1>
    %cst_6 = arith.constant 0.000000e+00 : f32
    %cst_7 = arith.constant -1.000000e+10 : f32
    %17 = vector.broadcast %cst_6 : f32 to vector<16x1xf32>
    %18 = vector.broadcast %cst_7 : f32 to vector<16x1xf32>
    %19 = arith.select %16, %17, %18 : vector<16x1xi1>, vector<16x1xf32>
    %c0_8 = arith.constant 0 : index
    %c0_9 = arith.constant 0 : index
    %20 = vector.load %arg6[%c0_8, %c0_9] : memref<1x64xf32, #tpu.memory_space<vmem>>, vector<1x64xf32>
    %21 = vector.broadcast %20 : vector<1x64xf32> to vector<16x64xf32>
    %22 = arith.mulf %10, %21 : vector<16x64xf32>
    %cst_10 = arith.constant dense<0.000000e+00> : vector<16xf32>
    %23 = vector.multi_reduction <add>, %22, %cst_10 [1] : vector<16x64xf32> to vector<16xf32>
    %24 = vector.shape_cast %23 : vector<16xf32> to vector<16x1xf32>
    %c0_11 = arith.constant 0 : index
    %c0_12 = arith.constant 0 : index
    %25 = vector.load %arg7[%c0_11, %c0_12] : memref<1x1xf32, #tpu.memory_space<vmem>>, vector<1x1xf32>
    %26 = vector.broadcast %25 : vector<1x1xf32> to vector<16x1xf32>
    %27 = arith.addf %24, %26 : vector<16x1xf32>
    %28 = arith.addf %27, %19 : vector<16x1xf32>
    %cst_13 = arith.constant dense<0xFF800000> : vector<1xf32>
    %29 = vector.multi_reduction <maximumf>, %28, %cst_13 [0] : vector<16x1xf32> to vector<1xf32>
    %30 = vector.shape_cast %29 : vector<1xf32> to vector<1x1xf32>
    %31 = vector.broadcast %30 : vector<1x1xf32> to vector<16x1xf32>
    %32 = arith.subf %28, %31 : vector<16x1xf32>
    %33 = math.exp %32 : vector<16x1xf32>
    %cst_14 = arith.constant dense<0.000000e+00> : vector<1xf32>
    %34 = vector.multi_reduction <add>, %33, %cst_14 [0] : vector<16x1xf32> to vector<1xf32>
    %35 = vector.shape_cast %34 : vector<1xf32> to vector<1x1xf32>
    %36 = vector.broadcast %35 : vector<1x1xf32> to vector<16x1xf32>
    %37 = arith.divf %33, %36 : vector<16x1xf32>
    %38 = vector.broadcast %37 : vector<16x1xf32> to vector<16x64xf32>
    %39 = arith.mulf %38, %10 : vector<16x64xf32>
    %cst_15 = arith.constant dense<0.000000e+00> : vector<64xf32>
    %40 = vector.multi_reduction <add>, %39, %cst_15 [0] : vector<16x64xf32> to vector<64xf32>
    %41 = vector.shape_cast %40 : vector<64xf32> to vector<1x64xf32>
    %42 = vector.broadcast %1 : i32 to vector<16x1xi32>
    %43 = arith.cmpi eq, %11, %42 : vector<16x1xi32>
    %44 = arith.extui %43 : vector<16x1xi1> to vector<16x1xi32>
    %45 = arith.sitofp %44 : vector<16x1xi32> to vector<16x1xf32>
    %46 = vector.broadcast %3 : i32 to vector<16x1xi32>
    %47 = arith.cmpi eq, %11, %46 : vector<16x1xi32>
    %48 = arith.extui %47 : vector<16x1xi1> to vector<16x1xi32>
    %49 = arith.sitofp %48 : vector<16x1xi32> to vector<16x1xf32>
    %50 = vector.broadcast %45 : vector<16x1xf32> to vector<16x64xf32>
    %51 = arith.mulf %50, %10 : vector<16x64xf32>
    %cst_16 = arith.constant dense<0.000000e+00> : vector<64xf32>
    %52 = vector.multi_reduction <add>, %51, %cst_16 [0] : vector<16x64xf32> to vector<64xf32>
    %53 = vector.shape_cast %52 : vector<64xf32> to vector<1x64xf32>
    %54 = vector.broadcast %49 : vector<16x1xf32> to vector<16x64xf32>
    %55 = arith.mulf %54, %10 : vector<16x64xf32>
    %cst_17 = arith.constant dense<0.000000e+00> : vector<64xf32>
    %56 = vector.multi_reduction <add>, %55, %cst_17 [0] : vector<16x64xf32> to vector<64xf32>
    %57 = vector.shape_cast %56 : vector<64xf32> to vector<1x64xf32>
    %58 = tpu.concatenate %53, %57, %41 in 1 : vector<1x64xf32>, vector<1x64xf32>, vector<1x64xf32> -> vector<1x192xf32>
    %c0_18 = arith.constant 0 : index
    %c0_19 = arith.constant 0 : index
    %c0_20 = arith.constant 0 : index
    %59 = vector.load %arg8[%c0_18, %c0_19, %c0_20] : memref<1x1x192xf32, #tpu.memory_space<vmem>>, vector<1x1x192xf32>
    %60 = vector.shape_cast %59 : vector<1x1x192xf32> to vector<1x192xf32>
    %61 = vector.shape_cast %58 : vector<1x192xf32> to vector<1x1x192xf32>
    tpu.vector_store %arg8[%c0_18, %c0_19, %c0_20], %61 {strides = array<i32>} : memref<1x1x192xf32, #tpu.memory_space<vmem>>, vector<1x1x192xf32>,
    return
  }
  func.func @transform_0(%arg0: i32, %arg1: memref<4xi32, #tpu.memory_space<smem>>, %arg2: memref<4xi32, #tpu.memory_space<smem>>) -> (i32, i32, i32) {
    %c0_i32 = arith.constant 0 : i32
    %c0_i32_0 = arith.constant 0 : i32
    %c0_i32_1 = arith.constant 0 : i32
    return %arg0, %c0_i32, %c0_i32_0 : i32, i32, i32
  }
  func.func @transform_1(%arg0: i32, %arg1: memref<4xi32, #tpu.memory_space<smem>>, %arg2: memref<4xi32, #tpu.memory_space<smem>>) -> (i32, i32) {
    %c0_i32 = arith.constant 0 : i32
    %c0_i32_0 = arith.constant 0 : i32
    %c0_i32_1 = arith.constant 0 : i32
    return %c0_i32, %c0_i32_0 : i32, i32
  }
  func.func @transform_2(%arg0: i32, %arg1: memref<4xi32, #tpu.memory_space<smem>>, %arg2: memref<4xi32, #tpu.memory_space<smem>>) -> (i32, i32) {
    %c0_i32 = arith.constant 0 : i32
    %c0_i32_0 = arith.constant 0 : i32
    %c0_i32_1 = arith.constant 0 : i32
    return %c0_i32, %c0_i32_0 : i32, i32
  }
  func.func @transform_3(%arg0: i32, %arg1: memref<4xi32, #tpu.memory_space<smem>>, %arg2: memref<4xi32, #tpu.memory_space<smem>>) -> (i32, i32) {
    %c0_i32 = arith.constant 0 : i32
    %c0_i32_0 = arith.constant 0 : i32
    %c0_i32_1 = arith.constant 0 : i32
    return %c0_i32, %c0_i32_0 : i32, i32
  }
  func.func @transform_4(%arg0: i32, %arg1: memref<4xi32, #tpu.memory_space<smem>>, %arg2: memref<4xi32, #tpu.memory_space<smem>>) -> (i32, i32) {
    %c0_i32 = arith.constant 0 : i32
    %c0_i32_0 = arith.constant 0 : i32
    %c0_i32_1 = arith.constant 0 : i32
    return %c0_i32, %c0_i32_0 : i32, i32
  }
  func.func @transform_5(%arg0: i32, %arg1: memref<4xi32, #tpu.memory_space<smem>>, %arg2: memref<4xi32, #tpu.memory_space<smem>>) -> (i32, i32, i32) {
    %c0_i32 = arith.constant 0 : i32
    %c0_i32_0 = arith.constant 0 : i32
    %c0_i32_1 = arith.constant 0 : i32
    return %arg0, %c0_i32, %c0_i32_0 : i32, i32, i32
  }
}

</mosaic_0001>

<bundles_post_ra>
// kernel: tpu_custom_call.1
= control target key start
LH: loop header
LB: loop body
LE: loop exit
PB: predicated region body
PF: predicated region fallthrough
CT: control target
= control target key end

     0   :  { %s1208_s0 = inlined_call_operand.vmem [shape: s32[4], index: 0, kind: input, shape index: {}]   ;;  %s1209_s2 = inlined_call_operand.hbm [shape: f32[4,16,32], index: 2, kind: input, shape index: {}]   ;;  %s1210_s3 = inlined_call_operand.hbm [shape: f32[32,64], index: 3, kind: input, shape index: {}]   ;;  %s1211_s4 = inlined_call_operand.vmem [shape: f32[1,64], index: 4, kind: input, shape index: {}]   ;;  %s1212_s5 = inlined_call_operand.vmem [shape: f32[1,64], index: 5, kind: input, shape index: {}]   ;;  %s1213_s7 = inlined_call_operand.hbm [shape: f32[4,1,192], index: 7, kind: output, shape index: {}]   ;;  %s1214_s1 = inlined_call_operand.vmem [shape: s32[4], index: 1, kind: input, shape index: {}]   ;;  %s1215_s6 = inlined_call_operand.<no memory space> [shape: f32[1,1], index: 6, kind: input, shape index: {}]  }
   0x1   :  { %s12_s26 = sshll.u32 %s1208_s0, 4  ;;  %s16_s29 = sshll.u32 %s1214_s1, 4  ;;  %v20_v0 = vstv %s1215_s6  ;;  %s13_s26 = int_to_ptr.vmem [resolvable:$true] %s12_s26  ;;  %s17_s29 = int_to_ptr.vmem [resolvable:$true] %s16_s29 }
   0x2   :  { %21 = vst [vmem:[#allocation5] sm:$0x1] %v20_v0  ;;  %s741_s9 = scalar_lea.vmem %s13_s26, 16  ;;  %p746_p1 = scmp.lt.s32.totalorder %s13_s26, %s13_s26 }
   0x3   :  { %p742_p0 = scmp.ne.s32.totalorder %s13_s26, %s741_s9  ;;  %p747_p2 = scmp.lt.s32.totalorder %s741_s9, %s741_s9 }
   0x5   :  { %p748_p3 = por %p747_p2, %p746_p1 }
   0x7   :  { %p749_p4 = pnand %p748_p3, %p742_p0 }
   0x9   :  { %752 = shalt.err (!%p749_p4)  }
   0xa   :  { %s897_s10 = smov [#allocation3]   ;;  %s753_s0 = scalar_lea.vmem %s17_s29, 16 }
   0xb   :  { %15 = dma.vmem_to_smem %s13_s26, 16, %s897_s10, [#allocation2] }
   0xc   :  { %p754_p5 = scmp.ne.s32.totalorder %s17_s29, %s753_s0  ;;  %p758_p6 = scmp.lt.s32.totalorder %s17_s29, %s17_s29 }
   0xd   :  { %p759_p7 = scmp.lt.s32.totalorder %s753_s0, %s753_s0 }
   0xf   :  { %p760_p8 = por %p759_p7, %p758_p6 }
  0x11   :  { %p761_p9 = pnand %p760_p8, %p754_p5 }
  0x13   :  { %764 = shalt.err (!%p761_p9)  }
  0x14   :  { %s898_s1 = smov [#allocation4]  }
  0x15   :  { %19 = dma.vmem_to_smem %s17_s29, 16, %s898_s1, [#allocation2] }
  0x16   :  { %867 = dma.done.wait [#allocation2], 32 }
  0x17   :  { %868 = vsyncadd [#allocation2], 4294967264 }
  0x18   :  { %23 = sfence }
  0x19   :  { %24 = vsyncpa [#allocation7], 0 }
  0x1a   :  { %26 = vsyncpa [#allocation7 + $0x1], 0 }
  0x1b   :  { %27 = vsyncpa [#allocation10], 0 }
  0x1c   :  { %28 = vsyncpa [#allocation8], 0 }
  0x1d   :  { %30 = vsyncpa [#allocation8 + $0x1], 0  ;;  %s958_s6 = smov 0   ;;  %s960_s11 = smov 0  }
  0x1e   :  { %s962_s12 = smov 0   ;;  %s964_s13 = smov 0  }
  0x1f LB: > { %s979_s14 = sadd.s32 4294967295, %s895_s13   ;;  %s615_s15 = sadd.s32 4294967294, %s895_s13   ;;  %s895_s13 = sphi %s964_s13, %s1234_s13   ;;  %s891_s12 = sphi %s962_s12, %s1233_s12   ;;  %s887_s11 = sphi %s960_s11, %s1232_s11   ;;  %s883_s6 = sphi %s958_s6, %s1231_s6  }
  0x20   : > { %p56_p10 = scmp.ne.s32.totalorder %s887_s11, %s883_s6  ;;  %p1216_p11 = scmp.eq.s32.totalorder %s979_s14, 0 }
  0x21   : > { %p170_p13 = scmp.eq.s32.totalorder %s615_s15, 3  ;;  %p616_p1 = scmp.ge.s32.totalorder %s895_s13, 1 }
  0x22   : > { %p988_p0 = por %p1216_p11, %p56_p10  ;;  %p177_p3 = scmp.lt.s32.totalorder %s895_s13, 5 }
  0x23   : > { %p993_p2 = por %p170_p13, %p56_p10  ;;  %s899_s19 = smov [#allocation9]  }
  0x24   : > { %s1219_s16 = scalar_select %p988_p0, 1, 0 }
  0x25   : > { %s1220_s17 = scalar_select %p993_p2, 1, 0 }
  0x26   : > { %p998_p4 = pnand %p616_p1, %p177_p3  ;;  %s189_s20 = sshll.u32 %s899_s19, 4  ;;  %s190_s20 = int_to_ptr.vmem [resolvable:$true] %s189_s20 }
  0x27   : > { %s1011_s22 = sadd.s32 1, %s895_s13   ;;  %s43_s23 = sadd.s32 1, %s891_s12 }
  0x28   : > { %s1221_s18 = scalar_select %p998_p4, 1, 0 }
  0x29   : > { %p675_p5 = pneg %p998_p4  ;;  %s40_s24 = ssub.s32 %s895_s13, %s1011_s22 }
  0x2a   : > { %s765_s27 = scalar_lea.hbm %s1210_s3, 512 }
  0x2b   : > { %p1006_p6 = pnand %p675_p5, %p1216_p11  ;;  %p766_p7 = scmp.ne.s32.totalorder %s1210_s3, %s765_s27 }
  0x2c   : > { %p772_p13 = scmp.lt.u32.totalorder %s765_s27, %s1210_s3 }
  0x2d   : > { %p767_p8 = pneg %p1006_p6 }
  0x2f   : > { %p768_p9 = pnand %p767_p8, %p766_p7 }
  0x31   : > { %p769_p10 = pneg %p768_p9 }
  0x33   : > { %p774_p1 = pnand %p772_p13, %p769_p10 }
  0x35   : > { %777 = shalt.err (!%p774_p1)
}
  0x36   : > { %s778_s9 = scalar_lea.vmem %s190_s20, 512  ;;  %p786_p12 = scmp.lt.s32.totalorder %s190_s20, %s190_s20 }
  0x37   : > { %p779_p3 = scmp.ne.s32.totalorder %s190_s20, %s778_s9  ;;  %p787_p2 = scmp.lt.s32.totalorder %s778_s9, %s778_s9 }
  0x39   : > { %p781_p5 = pnand %p779_p3, %p767_p8  ;;  %p788_p0 = por %p787_p2, %p786_p12 }
  0x3b   : > { %p782_p11 = pneg %p781_p5 }
  0x3d   : > { %p789_p4 = pnand %p788_p0, %p782_p11 }
  0x3f   : > { %792 = shalt.err (!%p789_p4)
}
  0x40   : > { %s900_s10 = smov 128   ;;  %s901_s0 = smov 8  }
  0x41   : > { %678 = dma.hbm_to_vmem [thread:$0]  (!%p1006_p6), %s1210_s3, 512, %s190_s20, [#allocation10], %s900_s10, %s900_s10, %s901_s0  }
  0x42   : > { %p41_p11 = scmp.eq.s32.totalorder %s40_s24, 0  ;;  %p50_p12 = scmp.ne.s32.totalorder %s891_s12, %s887_s11 }
  0x43   : > { %p51_p0 = scmp.eq.s32.totalorder %s895_s13, 0  ;;  %p688_p2 = scmp.lt.s32.totalorder %s895_s13, 4 }
  0x44   : > { %s1040_s19 = scalar_select %p41_p11, %s891_s12, %s43_s23  }
  0x45   : > { %p52_p4 = por %p51_p0, %p50_p12  ;;  %p1223_p7 = scmp.eq.s32.totalorder %s979_s14, 3 }
  0x46   : > { %s212_s21 = sand.u32 1, %s891_s12   ;;  %s640_s26 = sshll.u32 %s895_s13, 8 }
  0x47   : > { %p1044_p8 = por %p1223_p7, %p50_p12  ;;  %s619_s27 = sshll.u32 %s212_s21, 4 }
  0x48   : > { %s1053_s30 = scalar_lea.hbm %s1209_s2, %s640_s26  ;;  %s216_s20 = scalar_lea.vmem [#allocation6], %s619_s27 }
  0x49   : > { %s223_s23 = sshll.u32 %s216_s20, 4  ;;  %p1055_p6 = pnand %p688_p2, %p52_p4  ;;  %s1059_s23 = int_to_ptr.vmem [resolvable:$true] %s223_s23 }
  0x4a   : > { %s1061_s8 = scalar_lea.sflag [#allocation7], %s212_s21  ;;  %s793_s9 = scalar_lea.hbm %s1053_s30, 256 }
  0x4b   : > { %p794_p9 = scmp.ne.s32.totalorder %s1053_s30, %s793_s9  ;;  %p795_p10 = pneg %p1055_p6 }
  0x4c   : > { %s798_s26 = scalar_lea.hbm %s1209_s2, 1024  ;;  %p799_p3 = scmp.lt.u32.totalorder %s1053_s30, %s1209_s2 }
  0x4d   : > { %p796_p13 = pnand %p795_p10, %p794_p9  ;;  %p800_p5 = scmp.lt.u32.totalorder %s798_s26, %s793_s9 }
  0x4e   : > { %p802_p12 = scmp.lt.u32.totalorder %s793_s9, %s1053_s30 }
  0x4f   : > { %p797_p1 = pneg %p796_p13  ;;  %p801_p11 = por %p800_p5, %p799_p3 }
  0x51   : > { %p803_p0 = por %p802_p12, %p801_p11 }
  0x53   : > { %p804_p2 = pnand %p803_p0, %p797_p1 }
  0x55   : > { %807 = shalt.err (!%p804_p2)
}
  0x56   : > { %s808_s21 = scalar_lea.vmem %s1059_s23, 256  ;;  %s902_s29 = smov [#allocation6]  }
  0x57   : > { %p809_p4 = scmp.ne.s32.totalorder %s1059_s23, %s808_s21  ;;  %s813_s20 = sshll.u32 %s902_s29, 4  ;;  %s814_s20 = int_to_ptr.vmem [resolvable:$false] %s813_s20 }
  0x58   : > { %s815_s1 = scalar_lea.vmem %s814_s20, 512  ;;  %p816_p13 = scmp.lt.s32.totalorder %s1059_s23, %s814_s20 }
  0x59   : > { %p811_p7 = pnand %p809_p4, %p795_p10  ;;  %p817_p3 = scmp.lt.s32.totalorder %s815_s1, %s808_s21 }
  0x5b   : > { %p812_p9 = pneg %p811_p7  ;;  %p818_p5 = por %p817_p3, %p816_p13 }
  0x5d   : > { %p819_p11 = pnand %p818_p5, %p812_p9 }
  0x5f   : > { %822 = shalt.err (!%p819_p11)
}
  0x60   : > { %682 = dma.hbm_to_vmem [thread:$0]  (!%p1055_p6), %s1053_s30, 256, %s1059_s23, %s1061_s8, %s900_s10, %s900_s10, %s901_s0  }
  0x61   : > { %p1226_p10 = scmp.ne.s32.totalorder %s1221_s18, 0 }
  0x62   : > { %s1095_s9 = sand.u32 (!%p1226_p10), 1, %s887_s11   ;;  %p1227_p1 = scmp.ne.s32.totalorder (!%p1226_p10), %s1219_s16, 0 }
  0x63   : > { %235 = sbr.rel (%p1226_p10) target bundleno = 717 (0x2cd), region = 40  ;;  %s623_s15 = sshll.u32 (!%p1226_p10), %s1095_s9, 4 }
  0x64   : > { %s238_s26 = scalar_lea.sflag (!%p1226_p10), [#allocation7], %s1095_s9  ;;  %s241_s27 = scalar_lea.vmem (!%p1226_p10), [#allocation6], %s623_s15 }
  0x6a   : > { %870 = dma.done.wait (%p1227_p1), %s238_s26, 256  }
  0x6b   : > { %872 = vsyncadd (%p1227_p1), %s238_s26, 4294967040  ;;  %p1228_p12 = scmp.eq.s32.totalorder %s979_s14, 0 }
  0x6d   : > { %874 = dma.done.wait (%p1228_p12), [#allocation10], 512   ;;  %p1229_p6 = pmov %p1228_p12 }
  0x6e   : > { %vm287_vm0 = vcmask 261120   ;;  %v276_v1 = vld [vmem:[#allocation9] sm:$0xff]  ;;  %v277_v2 = vld [vmem:[#allocation9 + $0x8] sm:$0xff]  ;;  %v278_v3 = vld [vmem:[#allocation9 + $0x10] sm:$0xff]  ;;  %v369_v9 = vlaneseq  ;;  %s273_s16 = sld [smem:[#allocation4 + %s979_s14]]  ;;  %v903_v15 = vmov 0.0  }
  0x6f   : > { %876 = vsyncadd (%p1229_p6), [#allocation10], 4294966784  ;;  %v659_v4 = vpack.c.bf16 %v277_v2, %v276_v1  ;;  %v279_v5 = vld [vmem:[#allocation9 + $0x18] sm:$0xff]  ;;  %v274_v6 = vld [vmem:[%s241_s27] sm:$0xff]  ;;  %vm391_vm3 = vcmask 523264   ;;  %s904_s23 = smov 64  }
  0x70   : > { %v663_v7 = vpack.c.bf16 %v279_v5, %v278_v3  ;;  %656 = vmatprep.mubr.msk.f32.mxu0 %vm287_vm0, %v274_v6  ;;  %v275_v8 = vld [vmem:[%s241_s27 + $0x8] sm:$0xff]  ;;  %v1109_v10 = vshrl.u32 %v369_v9, 7  ;;  %v905_v37 = vmov 0   ;;  %s272_s24 = sld [smem:[#allocation3 + %s979_s14]]  ;;  %v906_v42 = vmov -1e+10  }
  0x71   : > { %660 = vmatprep.subr.bf16.mxu0 %v659_v4  ;;  %v626_v13 = vld [vmem:[%s1211_s4] ss:$0 sm:$0xff]  ;;  %733 = vset.pattern.permute.xlu1 %v905_v37  ;;  %vm409_vm10 = vcmask 7168   ;;  %s625_s8 = sshll.u32 %s1095_s9, 1  ;;  %s641_s28 = sshll.u32 %s979_s14, 5  ;;  %vm517_vm13 = vcmp.lt.s32.totalorder %v369_v9, 192 }
  0x72   : > { %662 = vmatpush3.bf16.msra.mxu0 %v659_v4  ;;  %v1112_v11 = vadd.s32 8, %v1109_v10  ;;  %v629_v20 = vld [vmem:[%s1212_s5] ss:$0 sm:$0xff]  ;;  %734 = vset.pattern.permute.xlu0 %v905_v37  ;;  %s271_s21 = scalar_lea.vmem [#allocation11], %s625_s8  ;;  %s1165_s15 = scalar_lea.hbm %s1213_s7, %s641_s28 }
  0x73   : > { %664 = vmatprep.subr.bf16.mxu0 %v663_v7  ;;  %v630_v39 = vld [vmem:[#allocation5] ss:$0 sm:$0xff]  ;;  %s535_s29 = sshll.u32 %s271_s21, 4  ;;  %s521_s26 = scalar_lea.sflag [#allocation8], %s1095_s9  ;;  %s1167_s29 = int_to_ptr.vmem [resolvable:$true] %s535_s29 }
  0x74   : > { %v375_v12 = vstv %s273_s16  ;;  %s823_s27 = scalar_lea.vmem %s1167_s29, 32  ;;  %s908_s14 = smov [#allocation11]  }
  0x75   : > { %vm465_vm1 = vcmp.eq.s32.totalorder %v1112_v11, %v375_v12  ;;  %vm464_vm2 = vcmp.eq.s32.totalorder %v1109_v10, %v375_v12  ;;  %vm376_vm5 = vcmp.le.s32.totalorder %v1109_v10, %v375_v12  ;;  %vm377_vm7 = vcmp.le.s32.totalorder %v1112_v11, %v375_v12  ;;  %p824_p0 = scmp.ne.s32.totalorder %s1167_s29, %s823_s27  ;;  %s827_s16 = sshll.u32 %s908_s14, 4  ;;  %s828_s16 = int_to_ptr.vmem [resolvable:$false] %s827_s16 }
  0x76   : > { %666 = vmatpush3.bf16.msra.mxu0 %v663_v7  ;;  %v634_v16 = vsel %vm465_vm1, 1.0, %v903_v15  ;;  %v633_v19 = vsel %vm464_vm2, 1.0, %v903_v15  ;;  %v372_v38 = vstv %s272_s24  ;;  %s829_s18 = scalar_lea.vmem %s828_s16, 64  ;;  %p830_p7 = scmp.lt.s32.totalorder %s1167_s29, %s828_s16 }
  0x77   : > { %vm373_vm4 = vcmp.ge.s32.totalorder %v1109_v10, %v372_v38  ;;  %vm374_vm6 = vcmp.ge.s32.totalorder %v1112_v11, %v372_v38  ;;  %vm459_vm11 = vcmp.eq.s32.totalorder %v1112_v11, %v372_v38  ;;  %vm458_vm12 = vcmp.eq.s32.totalorder %v1109_v10, %v372_v38  ;;  %p825_p2 = pnand %p824_p0, %p1044_p8  ;;  %p831_p9 = scmp.lt.s32.totalorder %s829_s18, %s823_s27 }
  0x78   : > { %vm378_vm8 = vmand %vm373_vm4, %vm376_vm5 }
  0x79   : > { %657 = vmatmul.mubr.msk.f32.vlgmr.msra.gmra.mrb[0].mxu0 %vm287_vm0, %v275_v8  ;;  %vm379_vm9 = vmand %vm374_vm6, %vm377_vm7  ;;  %v380_v43 = vsel %vm378_vm8, 0.0, %v906_v42  ;;  %p826_p4 = pneg %p825_p2  ;;  %p832_p13 = por %p831_p9, %p830_p7 }
  0x7a   : > { %v381_v45 = vsel %vm379_vm9, 0.0, %v906_v42 }
  0x7b   : > { %p833_p3 = pnand %p832_p13, %p826_p4 }
 0x14c   : > { %v658_v14 = vpop.f32.mrb[0].mxu0 }
 0x14d   : > { %v1120_v17 = vadd.f32 %v658_v14, %v626_v13  ;;  %v360_v18 = vpop.f32.mrb[1].mxu0 }
 0x14e   : > { %v1126_v21 = vadd.f32 %v626_v13, %v360_v18  ;;  %v631_v18 = vsel %vm458_vm12, 1.0, %v903_v15 }
 0x14f   : > { %v482_v22 = vmul.f32 %v634_v16, %v1120_v17  ;;  %v390_v28 = vmul.f32 %v629_v20, %v1120_v17  ;;  %v632_v16 = vsel %vm459_vm11, 1.0, %v903_v15 }
 0x150   : > { %v481_v23 = vmul.f32 %v633_v19, %v1126_v21  ;;  %v389_v24 = vmul.f32 %v629_v20, %v1126_v21  ;;  %v471_v19 = vmul.f32 %v632_v16, %v1120_v17  ;;  %v470_v20 = vmul.f32 %v631_v18, %v1126_v21 }
 0x151   : > { %v484_v25 = vsel %vm391_vm3, %v482_v22, 0.0  ;;  %v395_v30 = vsel %vm391_vm3, %v390_v28, 0.0 }
 0x152   : > { %v483_v26 = vsel %vm391_vm3, %v481_v23, 0.0  ;;  %v392_v27 = vsel %vm391_vm3, %v389_v24, 0.0  ;;  %v473_v22 = vsel %vm391_vm3, %v471_v19, 0.0  ;;  %v472_v23 = vsel %vm391_vm3, %v470_v20, 0.0 }
 0x153   : > { %393 = vadd.xlane.f32.xlu0 %v392_v27  ;;  %v485_v29 = vadd.f32 %v484_v25, %v483_v26  ;;  %v474_v24 = vadd.f32 %v473_v22, %v472_v23 }
 0x155   : > { %v486_v31 = vrot.slane %v485_v29, 4  ;;  %v475_v25 = vrot.slane %v474_v24, 4 }
 0x157   : > { %396 = vadd.xlane.f32.xlu0 %v395_v30  ;;  %v487_v32 = vadd.f32 %v486_v31, %v485_v29  ;;  %v476_v27 = vadd.f32 %v475_v25, %v474_v24 }
 0x159   : > { %v488_v33 = vrot.slane %v487_v32, 2  ;;  %v477_v30 = vrot.slane %v476_v27, 2 }
 0x15b   : > { %v489_v34 = vadd.f32 %v488_v33, %v487_v32 }
 0x15d   : > { %v490_v35 = vrot.slane %v489_v34, 1 }
 0x15f   : > { %v491_v36 = vadd.f32 %v490_v35, %v489_v34  ;;  %v478_v34 = vadd.f32 %v477_v30, %v476_v27  ;;  %v907_v35 = vmov 1966171168  }
 0x16d   : > { %493 = vrot.lane.b32.xlu0 %v491_v36, %s904_s23  ;;  %v501_v36 = vunpack.c.l.s4 %v907_v35 }
 0x1e0   : > { %v394_v40 = vpop.xlane.xlu0 %393 }
 0x1e1   : > { %v405_v41 = vadd.f32 %v630_v39, %v394_v40  ;;  %v502_v40 = vunpack.c.0.s8 %v501_v36 }
 0x1e3   : > { %v407_v46 = vadd.f32 %v405_v41, %v380_v43  ;;  %v505_v43 = vsub.s32 %v502_v40, %v1109_v10 }
 0x1e4   : > { %v397_v44 = vpop.xlane.xlu0 %396 }
 0x1e5   : > { %v406_v47 = vadd.f32 %v630_v39, %v397_v44  ;;  %v410_v49 = vsel %vm409_vm10, %v407_v46, -inf  ;;  %v479_v39 = vrot.slane %v478_v34, 1 }
 0x1e7   : > { %v408_v48 = vadd.f32 %v406_v47, %v381_v45  ;;  %v480_v42 = vadd.f32 %v479_v39, %v478_v34 }
 0x1e8   : > { %v494_v41 = vpop.permute.xlu0 %493 }
 0x1e9   : > { %v411_v50 = vsel %vm409_vm10, %v408_v48, -inf  ;;  %v496_v45 = vsel %vm391_vm3, %v480_v42, %v494_v41 }
 0x1ea   : > { %v412_v51 = vmax.f32 %v410_v49, %v411_v50 }
 0x1ec   : > { %v413_v52 = vrot.slane %v412_v51, 4 }
 0x1ee   : > { %v414_v53 = vmax.f32 %v412_v51, %v413_v52 }
 0x1f0   : > { %v415_v54 = vrot.slane %v414_v53, 2 }
 0x1f2   : > { %v416_v55 = vmax.f32 %v414_v53, %v415_v54 }
 0x1f4   : > { %v417_v56 = vrot.slane %v416_v55, 1 }
 0x1f6   : > { %v418_v57 = vmax.f32 %v416_v55, %v417_v56 }
 0x1f8   : > { %v419_v58 = vsub.f32 %v407_v46, %v418_v57  ;;  %v420_v59 = vsub.f32 %v408_v48, %v418_v57 }
 0x1fa   : > { %v421_v60 = vmul.f32 1.442695, %v419_v58  ;;  %v423_v61 = vmul.f32 1.442695, %v420_v59 }
 0x1fc   : > { %735 = vpow2.f32 %v421_v60 }
 0x1fd   : > { %737 = vpow2.f32 %v423_v61 }
 0x206   : > { %v736_v62 = vpop.eup %735 }
 0x207   : > { %v738_v63 = vpop.eup %737  ;;  %v425_v0 = vsel %vm409_vm10, %v736_v62, 0.0 }
 0x208   : > { %v426_v1 = vsel %vm409_vm10, %v738_v63, 0.0 }
 0x209   : > { %v427_v2 = vadd.f32 %v426_v1, %v425_v0 }
 0x20b   : > { %v428_v3 = vrot.slane %v427_v2, 4 }
 0x20d   : > { %v429_v4 = vadd.f32 %v428_v3, %v427_v2 }
 0x20f   : > { %v430_v5 = vrot.slane %v429_v4, 2 }
 0x211   : > { %v431_v6 = vadd.f32 %v430_v5, %v429_v4 }
 0x213   : > { %v432_v7 = vrot.slane %v431_v6, 1 }
 0x215   : > { %v433_v8 = vadd.f32 %v432_v7, %v431_v6 }
 0x217   : > { %739 = vrcp.f32 %v433_v8 }
 0x221   : > { %v740_v12 = vpop.eup %739 }
 0x222   : > { %v435_v13 = vmul.f32 %v740_v12, %v736_v62  ;;  %v436_v14 = vmul.f32 %v740_v12, %v738_v63 }
 0x224   : > { %439 = vperm.xlu1 %733, %v435_v13  }
 0x228   : > { %444 = vperm.xlu1 %733, %v436_v14  }
 0x2a3   : > { %v440_v26 = vpop.permute.xlu1 %439 }
 0x2a4   : > { %v447_v11 = vmul.f32 %v440_v26, %v1126_v21 }
 0x2a6   : > { %v449_v15 = vsel %vm391_vm3, %v447_v11, 0.0 }
 0x2a7   : > { %v445_v28 = vpop.permute.xlu1 %444 }
 0x2a8   : > { %v448_v29 = vmul.f32 %v445_v28, %v1120_v17 }
 0x2aa   : > { %v450_v31 = vsel %vm391_vm3, %v448_v29, 0.0 }
 0x2ab   : > { %v451_v32 = vadd.f32 %v450_v31, %v449_v15 }
 0x2ad   : > { %v452_v33 = vrot.slane %v451_v32, 4 }
 0x2af   : > { %v453_v37 = vadd.f32 %v452_v33, %v451_v32 }
 0x2b1   : > { %v454_v38 = vrot.slane %v453_v37, 2 }
 0x2b3   : > { %v455_v21 = vadd.f32 %v454_v38, %v453_v37 }
 0x2b5   : > { %v456_v17 = vrot.slane %v455_v21, 1 }
 0x2b7   : > { %v457_v44 = vadd.f32 %v456_v17, %v455_v21 }
 0x2b9   : > { %v499_v46 = vcombine.low %v496_v45, %v457_v44 }
 0x2bb   : > { %v506_v47 = vrot.slane %v499_v46, %v505_v43 }
 0x2bd   : > { %v513_v48 = vrot.slane %v506_v47, %v505_v43 }
 0x2bf   : > { %519 = vst.msk [vmem:[%s271_s21] sm:$0x3] %vm517_vm13, %v513_v48 }
 0x2c0   : > { %836 = shalt.err (!%p833_p3)
}
 0x2c1   : > { %s837_s9 = scalar_lea.hbm %s1165_s15, 32  ;;  %s841_s30 = scalar_lea.hbm %s1213_s7, 128 }
 0x2c2   : > { %p838_p5 = scmp.ne.s32.totalorder %s1165_s15, %s837_s9  ;;  %p842_p1 = scmp.lt.u32.totalorder %s1165_s15, %s1213_s7 }
 0x2c3   : > { %p843_p12 = scmp.lt.u32.totalorder %s841_s30, %s837_s9  ;;  %p845_p0 = scmp.lt.u32.totalorder %s837_s9, %s1165_s15 }
 0x2c4   : > { %p839_p11 = pnand %p838_p5, %p1044_p8 }
 0x2c5   : > { %p844_p6 = por %p843_p12, %p842_p1 }
 0x2c6   : > { %p840_p10 = pneg %p839_p11 }
 0x2c7   : > { %p846_p2 = por %p845_p0, %p844_p6 }
 0x2c9   : > { %p847_p4 = pnand %p846_p2, %p840_p10 }
 0x2cb   : > { %850 = shalt.err (!%p847_p4)
}
 0x2cc   : > { %673 = dma.vmem_to_hbm [thread:$0]  (%p1044_p8), %s1167_s29, 32, %s1165_s15, %s521_s26  }
 0x2cd PF: > { %p690_p7 = scmp.ge.s32.totalorder %s895_s13, 2  ;;  %s547_s8 = sand.u32 1, %s883_s6  }
 0x2ce   : > { %p1230_p9 = scmp.ne.s32.totalorder %s1220_s17, 0  ;;  %s548_s28 = scalar_lea.sflag [#allocation8], %s547_s8 }
 0x2d0   : > { %p684_p13 = pnand %p690_p7, %p1230_p9 }
 0x2d2   : > { %878 = dma.done.wait (!%p684_p13), %s548_s28, 32  }
 0x2d3   : > { %880 = vsyncadd (!%p684_p13), %s548_s28, 4294967264  ;;  %p33_p3 = scmp.ge.s32.totalorder %s1011_s22, 6   ;;  %s1231_s6 = smov %s887_s11 }
 0x2d4   : > { %s1232_s11 = smov %s891_s12  ;;  %s1233_s12 = smov %s1040_s19 }
 0x2d5   : > { %s1234_s13 = smov %s1011_s22  ;;  %35 = sbr.rel (!%p33_p3) target bundleno = 31 (0x1f), region = 89 }
 0x2dc   :  { %553 = vsyncpa [#allocation7], 1 }
 0x2dd   :  { %555 = vsyncpa [#allocation7 + $0x1], 1 }
 0x2de   :  { %556 = vsyncpa [#allocation10], 1 }
 0x2df   :  { %557 = vsyncpa [#allocation8], 1 }
 0x2e0   :  { %559 = vsyncpa [#allocation8 + $0x1], 1 }

</bundles_post_ra>
